<compile_context>
chip_gen: v6e
topology: v6e:2x2x1
jax: 0.10.0
libtpu: 0.0.40
codegen_flags: <defaults>
</compile_context>

<pallas_src>
import functools
import math

import jax
import jax.numpy as jnp
from jax.experimental import pallas as pl
from jax.experimental.pallas import tpu as pltpu

LN_EPS = 1e-5  # nn.LayerNorm default
_INV_SQRT2 = 1.0 / math.sqrt(2.0)


def _round_up(x, m):
    return (x + m - 1) // m * m


def _vmem_capacity_bytes():
    """Physical per-core VMEM; conservative 64 MiB fallback if query fails."""
    try:
        return int(pltpu.get_tpu_info().vmem_capacity_bytes)
    except Exception:
        return 64 * 2**20


def _mlp_kernel(x_ref, gamma_ref, beta_ref, w1_ref, b1_ref, w2_ref, b2_ref,
                o_ref, *scratch, use_residual, d_orig, d_pad, multi_h):
    """Grid: (row tiles, hidden tiles).  Hidden axis is the fc2 reduction."""

    def layernorm():
        # f32 LayerNorm over the unpadded feature dim.
        x = x_ref[...].astype(jnp.float32)
        inv_d = 1.0 / d_orig
        mean = jnp.sum(x, axis=-1, keepdims=True) * inv_d
        centered = x - mean
        if d_pad != d_orig:
            # Exclude zero-padded lanes from the variance (they are nonzero
            # after centering).
            col = jax.lax.broadcasted_iota(jnp.int32, x.shape, 1)
            centered = jnp.where(col < d_orig, centered, 0.0)
        var = jnp.sum(centered * centered, axis=-1, keepdims=True) * inv_d
        xn = centered * jax.lax.rsqrt(var + LN_EPS)
        return xn * gamma_ref[...] + beta_ref[...]          # gamma/beta f32

    if multi_h:
        xn_ref, acc_ref = scratch
        hs = pl.program_id(1)
        nh = pl.num_programs(1)

        @pl.when(hs == 0)
        def _():
            xn_ref[...] = layernorm().astype(xn_ref.dtype)   # MXU input dtype

        xn = xn_ref[...]
    else:
        xn = layernorm().astype(w1_ref.dtype)

    # ---- fc1 slice: (tm, D) @ (D, th) + b1[th]  (MXU, f32 accumulation) ----
    h = jnp.dot(xn, w1_ref[...], preferred_element_type=jnp.float32)
    h = h + b1_ref[...]

    # ---- exact GELU (PyTorch nn.GELU default, erf-based) ----
    h = 0.5 * h * (1.0 + jax.lax.erf(h * _INV_SQRT2))

    # ---- fc2 partial: (tm, th) @ (th, D_out) ----
    part = jnp.dot(h.astype(w2_ref.dtype), w2_ref[...],
                   preferred_element_type=jnp.float32)

    def finalize(acc):
        y = acc + b2_ref[...]
        if use_residual:
            y = y + x_ref[...].astype(jnp.float32)
        o_ref[...] = y.astype(o_ref.dtype)

    if multi_h:
        # First reduction step writes directly (no zero-init read-modify-write).
        @pl.when(hs == 0)
        def _():
            acc_ref[...] = part

        @pl.when(hs != 0)
        def _():
            acc_ref[...] += part

        @pl.when(hs == nh - 1)
        def _():
            finalize(acc_ref[...])
    else:
        finalize(part)


def mlp_pallas(x, gamma, beta, w1, b1, w2, b2, *, use_residual=True,
               tm=None, th=None, mxu_dtype=None):
    """x: (..., in_dim).  Weights follow PyTorch Linear semantics
    pre-transposed: w1 (in_dim, hidden), w2 (hidden, out_dim); biases (dim,)
    or (1, dim).  mxu_dtype (e.g. jnp.bfloat16) optionally casts weights and
    MXU activations for 2-3x MXU throughput; f32 accumulation is kept."""
    orig_shape = x.shape
    in_dim = orig_shape[-1]
    hidden = w1.shape[1]
    out_dim = w2.shape[1]
    assert w1.shape[0] == in_dim and w2.shape[0] == hidden
    if use_residual:
        assert in_dim == out_dim

    if mxu_dtype is not None:
        w1 = w1.astype(mxu_dtype)
        w2 = w2.astype(mxu_dtype)
    w_dtype = w1.dtype

    # Lane-dense feature dims (multiples of 128).
    d_pad = _round_up(in_dim, 128)
    do_pad = _round_up(out_dim, 128)
    h_pad128 = _round_up(hidden, 128)

    x2 = x.reshape(-1, in_dim)
    n = x2.shape[0]

    itm_x = jnp.dtype(x.dtype).itemsize
    w_it = jnp.dtype(w_dtype).itemsize
    # Sublane multiple per input dtype: 8 (f32) / 16 (bf16) / 32 (int8/fp8).
    sub = {4: 8, 2: 16, 1: 32}.get(itm_x, 8)

    # ---- Per-chip VMEM budget (clamped to physical capacity) ----
    vmem_cap = _vmem_capacity_bytes()
    usable = max(vmem_cap - (8 << 20), 24 << 20)   # leave ~8 MiB headroom

    # Weight-resident fast path: full padded weights (double-buffered) small
    # relative to the budget -> collapse the hidden axis, load weights once.
    full_w_bytes = 2 * (d_pad * h_pad128 + h_pad128 * do_pad) * w_it
    weights_resident = full_w_bytes <= usable // 3

    if th is None:
        th_eff = h_pad128 if weights_resident else min(512, h_pad128)
    else:
        th_eff = _round_up(min(th, h_pad128), 128)

    if tm is None:
        if weights_resident:
            tm_target = 256                     # no weight restream to amortize
        elif vmem_cap <= (64 << 20):            # v7x-class (64 MiB / TC)
            tm_target = 512                     # ~310 flop/byte roofline
        else:                                   # v5e / v6e (128 MiB)
            tm_target = 768                     # clears ~640 flop/byte (bf16)
    else:
        tm_target = _round_up(tm, sub)
    tm_eff = int(min(tm_target, _round_up(n, sub)))

    def _needed(tm_, th_):
        multi = (_round_up(hidden, th_) // th_) > 1
        v = (2 * tm_ * d_pad * itm_x                      # x blocks
             + 2 * tm_ * do_pad * itm_x                   # out blocks
             + 2 * (d_pad * th_ + th_ * do_pad) * w_it    # weight tiles
             + 2 * (th_ + do_pad + 2 * d_pad) * 4)        # biases + LN affine
        if multi:
            v += tm_ * d_pad * w_it + tm_ * do_pad * 4    # xn + f32 acc scratch
        return v

    # Shrink hidden tile first, then row tile, until working set fits budget.
    while th_eff > 128 and _needed(tm_eff, th_eff) > usable:
        th_eff = _round_up(max(128, th_eff // 2), 128)
    while tm_eff > sub and _needed(tm_eff, th_eff) > usable:
        tm_eff = max(sub, _round_up(tm_eff // 2, sub))

    h_pad = _round_up(hidden, th_eff)
    nh = h_pad // th_eff
    multi_h = nh > 1

    # ---- Zero-pad inputs / params; pre-cast small per-feature params to f32 ----
    if d_pad != in_dim:
        x2 = jnp.pad(x2, ((0, 0), (0, d_pad - in_dim)))
    gamma_p = jnp.pad(gamma.astype(jnp.float32).reshape(1, in_dim),
                      ((0, 0), (0, d_pad - in_dim)))
    beta_p = jnp.pad(beta.astype(jnp.float32).reshape(1, in_dim),
                     ((0, 0), (0, d_pad - in_dim)))
    w1_p = jnp.pad(w1, ((0, d_pad - in_dim), (0, h_pad - hidden)))
    b1_p = jnp.pad(b1.astype(jnp.float32).reshape(1, hidden),
                   ((0, 0), (0, h_pad - hidden)))
    w2_p = jnp.pad(w2, ((0, h_pad - hidden), (0, do_pad - out_dim)))
    b2_p = jnp.pad(b2.astype(jnp.float32).reshape(1, out_dim),
                   ((0, 0), (0, do_pad - out_dim)))

    row_tiles = pl.cdiv(n, tm_eff)
    grid = (row_tiles, nh)

    kernel = functools.partial(_mlp_kernel, use_residual=use_residual,
                               d_orig=in_dim, d_pad=d_pad, multi_h=multi_h)

    need = _needed(tm_eff, th_eff)
    vmem_limit = int(min(max(32 << 20, 2 * need, need), usable))

    # Weights are re-streamed from HBM once per row tile unless the hidden
    # axis collapsed (nh == 1: constant block index -> loaded exactly once).
    restream = 1 if nh == 1 else int(row_tiles)
    cost = pl.CostEstimate(
        flops=int(2 * n * (in_dim * hidden + hidden * out_dim)),
        transcendentals=int(n * hidden),
        bytes_accessed=int(x2.size * itm_x
                           + restream * (w1_p.size + w2_p.size) * w_it
                           + n * do_pad * itm_x),
    )

    scratch_shapes = []
    if multi_h:
        scratch_shapes = [
            pltpu.VMEM((tm_eff, d_pad), w_dtype),      # normalized x (MXU feed)
            pltpu.VMEM((tm_eff, do_pad), jnp.float32), # fc2 accumulator
        ]

    out = pl.pallas_call(
        kernel,
        out_shape=jax.ShapeDtypeStruct((n, do_pad), x.dtype),
        grid_spec=pltpu.PrefetchScalarGridSpec(
            num_scalar_prefetch=0,
            grid=grid,
            in_specs=[
                pl.BlockSpec((tm_eff, d_pad), lambda i, h: (i, 0)),   # x rows
                pl.BlockSpec((1, d_pad), lambda i, h: (0, 0)),        # gamma
                pl.BlockSpec((1, d_pad), lambda i, h: (0, 0)),        # beta
                pl.BlockSpec((d_pad, th_eff), lambda i, h: (0, h)),   # w1 tile
                pl.BlockSpec((1, th_eff), lambda i, h: (0, h)),       # b1 tile
                pl.BlockSpec((th_eff, do_pad), lambda i, h: (h, 0)),  # w2 tile
                pl.BlockSpec((1, do_pad), lambda i, h: (0, 0)),       # b2
            ],
            out_specs=pl.BlockSpec((tm_eff, do_pad), lambda i, h: (i, 0)),
            scratch_shapes=scratch_shapes),
        compiler_params=pltpu.CompilerParams(
            dimension_semantics=("parallel", "arbitrary"),
            vmem_limit_bytes=vmem_limit),
        cost_estimate=cost,
    )(x2, gamma_p, beta_p, w1_p, b1_p, w2_p, b2_p)

    out = out[:, :out_dim]
    return out.reshape(orig_shape[:-1] + (out_dim,))


def mlp_reference(x, gamma, beta, w1, b1, w2, b2, *, use_residual=True):
    residual = x
    mean = jnp.mean(x, axis=-1, keepdims=True)
    var = jnp.mean((x - mean) ** 2, axis=-1, keepdims=True)
    xn = (x - mean) / jnp.sqrt(var + LN_EPS)
    xn = xn * gamma.reshape(-1) + beta.reshape(-1)
    h = xn @ w1 + b1.reshape(-1)
    h = 0.5 * h * (1.0 + jax.lax.erf(h / math.sqrt(2.0)))
    y = h @ w2 + b2.reshape(-1)
    if use_residual:
        y = y + residual
    return y


if __name__ == "__main__":
    # Small shapes: batch=2, seq=8, in_dim=out_dim=32, hidden_dim=64
    B, S, D, H = 2, 8, 32, 64
    key = jax.random.PRNGKey(0)
    kx, k1, k2, k3, k4 = jax.random.split(key, 5)

    x = jax.random.normal(kx, (B, S, D), dtype=jnp.float32)

    # Deterministic synthetic parameters (no checkpoint load).
    gamma = jnp.ones((1, D), dtype=jnp.float32)
    beta = jnp.zeros((1, D), dtype=jnp.float32)
    w1 = jax.random.normal(k1, (D, H), dtype=jnp.float32) * 0.05
    b1 = jax.random.normal(k2, (1, H), dtype=jnp.float32) * 0.01
    w2 = jax.random.normal(k3, (H, D), dtype=jnp.float32) * 0.05
    b2 = jax.random.normal(k4, (1, D), dtype=jnp.float32) * 0.01

    out = mlp_pallas(x, gamma, beta, w1, b1, w2, b2, use_residual=True)
    out = jax.block_until_ready(out)

    ref = mlp_reference(x, gamma, beta, w1, b1, w2, b2, use_residual=True)
    assert out.shape == (B, S, D)
    assert jnp.allclose(out, ref, atol=3e-5, rtol=3e-5), "mismatch vs reference"

    print("KERNEL_OK")
</pallas_src>

<mosaic_0001>
module attributes {stable_mosaic.version = 11 : i64} {
  func.func @_mlp_kernel(%arg0: i32, %arg1: i32, %arg2: memref<16x128xf32, #tpu.memory_space<vmem>>, %arg3: memref<1x128xf32, #tpu.memory_space<vmem>>, %arg4: memref<1x128xf32, #tpu.memory_space<vmem>>, %arg5: memref<128x128xf32, #tpu.memory_space<vmem>>, %arg6: memref<1x128xf32, #tpu.memory_space<vmem>>, %arg7: memref<128x128xf32, #tpu.memory_space<vmem>>, %arg8: memref<1x128xf32, #tpu.memory_space<vmem>>, %arg9: memref<16x128xf32, #tpu.memory_space<vmem>>) attributes {dimension_semantics = [#tpu.dimension_semantics<parallel>, #tpu.dimension_semantics<arbitrary>], iteration_bounds = array<i64: 1, 1>, scalar_prefetch = 0 : i64, scratch_operands = 0 : i64, tpu.core_type = #tpu.core_type<tc>, window_params = [{transform_indices = @transform_0, window_bounds = array<i64: 16, 128>}, {pipeline_mode = #tpu.pipeline_mode<synchronous>, transform_indices = @transform_1, window_bounds = array<i64: 1, 128>}, {pipeline_mode = #tpu.pipeline_mode<synchronous>, transform_indices = @transform_2, window_bounds = array<i64: 1, 128>}, {transform_indices = @transform_3, window_bounds = array<i64: 128, 128>}, {transform_indices = @transform_4, window_bounds = array<i64: 1, 128>}, {transform_indices = @transform_5, window_bounds = array<i64: 128, 128>}, {pipeline_mode = #tpu.pipeline_mode<synchronous>, transform_indices = @transform_6, window_bounds = array<i64: 1, 128>}, {transform_indices = @transform_7, window_bounds = array<i64: 16, 128>}]} {
    %c0 = arith.constant 0 : index
    %c0_0 = arith.constant 0 : index
    %0 = vector.load %arg2[%c0, %c0_0] : memref<16x128xf32, #tpu.memory_space<vmem>>, vector<16x128xf32>
    %cst = arith.constant dense<0.000000e+00> : vector<16xf32>
    %1 = vector.multi_reduction <add>, %0, %cst [1] : vector<16x128xf32> to vector<16xf32>
    %2 = vector.shape_cast %1 : vector<16xf32> to vector<16x1xf32>
    %cst_1 = arith.constant 3.125000e-02 : f32
    %3 = vector.broadcast %cst_1 : f32 to vector<16x1xf32>
    %4 = arith.mulf %2, %3 : vector<16x1xf32>
    %5 = vector.broadcast %4 : vector<16x1xf32> to vector<16x128xf32>
    %6 = arith.subf %0, %5 : vector<16x128xf32>
    %7 = tpu.iota {dimensions = array<i32: 1>} : vector<16x128xi32>
    %c32_i32 = arith.constant 32 : i32
    %8 = vector.broadcast %c32_i32 : i32 to vector<16x128xi32>
    %9 = arith.cmpi slt, %7, %8 : vector<16x128xi32>
    %cst_2 = arith.constant 0.000000e+00 : f32
    %10 = vector.broadcast %cst_2 : f32 to vector<16x128xf32>
    %11 = arith.select %9, %6, %10 : vector<16x128xi1>, vector<16x128xf32>
    %12 = arith.mulf %11, %11 : vector<16x128xf32>
    %cst_3 = arith.constant dense<0.000000e+00> : vector<16xf32>
    %13 = vector.multi_reduction <add>, %12, %cst_3 [1] : vector<16x128xf32> to vector<16xf32>
    %14 = vector.shape_cast %13 : vector<16xf32> to vector<16x1xf32>
    %cst_4 = arith.constant 3.125000e-02 : f32
    %15 = vector.broadcast %cst_4 : f32 to vector<16x1xf32>
    %16 = arith.mulf %14, %15 : vector<16x1xf32>
    %cst_5 = arith.constant 9.99999974E-6 : f32
    %17 = vector.broadcast %cst_5 : f32 to vector<16x1xf32>
    %18 = arith.addf %16, %17 : vector<16x1xf32>
    %19 = math.rsqrt %18 : vector<16x1xf32>
    %20 = vector.broadcast %19 : vector<16x1xf32> to vector<16x128xf32>
    %21 = arith.mulf %11, %20 : vector<16x128xf32>
    %c0_6 = arith.constant 0 : index
    %c0_7 = arith.constant 0 : index
    %22 = vector.load %arg3[%c0_6, %c0_7] : memref<1x128xf32, #tpu.memory_space<vmem>>, vector<1x128xf32>
    %23 = vector.broadcast %22 : vector<1x128xf32> to vector<16x128xf32>
    %24 = arith.mulf %21, %23 : vector<16x128xf32>
    %c0_8 = arith.constant 0 : index
    %c0_9 = arith.constant 0 : index
    %25 = vector.load %arg4[%c0_8, %c0_9] : memref<1x128xf32, #tpu.memory_space<vmem>>, vector<1x128xf32>
    %26 = vector.broadcast %25 : vector<1x128xf32> to vector<16x128xf32>
    %27 = arith.addf %24, %26 : vector<16x128xf32>
    %c0_10 = arith.constant 0 : index
    %c0_11 = arith.constant 0 : index
    %28 = vector.load %arg5[%c0_10, %c0_11] : memref<128x128xf32, #tpu.memory_space<vmem>>, vector<128x128xf32>
    %cst_12 = arith.constant dense<0.000000e+00> : vector<16x128xf32>
    %29 = tpu.matmul %27, %28, %cst_12 {dimension_numbers = #tpu.dot_dimension_numbers<[1], [0], [0], [1], [0, 0, 1, 1], [], []>} : vector<16x128xf32>, vector<128x128xf32>, vector<16x128xf32> -> vector<16x128xf32>
    %c0_13 = arith.constant 0 : index
    %c0_14 = arith.constant 0 : index
    %30 = vector.load %arg6[%c0_13, %c0_14] : memref<1x128xf32, #tpu.memory_space<vmem>>, vector<1x128xf32>
    %31 = vector.broadcast %30 : vector<1x128xf32> to vector<16x128xf32>
    %32 = arith.addf %29, %31 : vector<16x128xf32>
    %cst_15 = arith.constant 5.000000e-01 : f32
    %33 = vector.broadcast %cst_15 : f32 to vector<16x128xf32>
    %34 = arith.mulf %33, %32 : vector<16x128xf32>
    %cst_16 = arith.constant 0.707106769 : f32
    %35 = vector.broadcast %cst_16 : f32 to vector<16x128xf32>
    %36 = arith.mulf %32, %35 : vector<16x128xf32>
    %37 = math.erf %36 : vector<16x128xf32>
    %cst_17 = arith.constant 1.000000e+00 : f32
    %38 = vector.broadcast %cst_17 : f32 to vector<16x128xf32>
    %39 = arith.addf %38, %37 : vector<16x128xf32>
    %40 = arith.mulf %34, %39 : vector<16x128xf32>
    %c0_18 = arith.constant 0 : index
    %c0_19 = arith.constant 0 : index
    %41 = vector.load %arg7[%c0_18, %c0_19] : memref<128x128xf32, #tpu.memory_space<vmem>>, vector<128x128xf32>
    %cst_20 = arith.constant dense<0.000000e+00> : vector<16x128xf32>
    %42 = tpu.matmul %40, %41, %cst_20 {dimension_numbers = #tpu.dot_dimension_numbers<[1], [0], [0], [1], [0, 0, 1, 1], [], []>} : vector<16x128xf32>, vector<128x128xf32>, vector<16x128xf32> -> vector<16x128xf32>
    %c0_21 = arith.constant 0 : index
    %c0_22 = arith.constant 0 : index
    %43 = vector.load %arg8[%c0_21, %c0_22] : memref<1x128xf32, #tpu.memory_space<vmem>>, vector<1x128xf32>
    %44 = vector.broadcast %43 : vector<1x128xf32> to vector<16x128xf32>
    %45 = arith.addf %42, %44 : vector<16x128xf32>
    %c0_23 = arith.constant 0 : index
    %c0_24 = arith.constant 0 : index
    %46 = vector.load %arg2[%c0_23, %c0_24] : memref<16x128xf32, #tpu.memory_space<vmem>>, vector<16x128xf32>
    %47 = arith.addf %45, %46 : vector<16x128xf32>
    %c0_25 = arith.constant 0 : index
    %c0_26 = arith.constant 0 : index
    %48 = vector.load %arg9[%c0_25, %c0_26] : memref<16x128xf32, #tpu.memory_space<vmem>>, vector<16x128xf32>
    tpu.vector_store %arg9[%c0_25, %c0_26], %47 {strides = array<i32>} : memref<16x128xf32, #tpu.memory_space<vmem>>, vector<16x128xf32>,
    return
  }
  func.func @transform_0(%arg0: i32, %arg1: i32) -> (i32, i32) {
    %c0_i32 = arith.constant 0 : i32
    %c0_i32_0 = arith.constant 0 : i32
    return %arg0, %c0_i32 : i32, i32
  }
  func.func @transform_1(%arg0: i32, %arg1: i32) -> (i32, i32) {
    %c0_i32 = arith.constant 0 : i32
    %c0_i32_0 = arith.constant 0 : i32
    %c0_i32_1 = arith.constant 0 : i32
    return %c0_i32, %c0_i32_0 : i32, i32
  }
  func.func @transform_2(%arg0: i32, %arg1: i32) -> (i32, i32) {
    %c0_i32 = arith.constant 0 : i32
    %c0_i32_0 = arith.constant 0 : i32
    %c0_i32_1 = arith.constant 0 : i32
    return %c0_i32, %c0_i32_0 : i32, i32
  }
  func.func @transform_3(%arg0: i32, %arg1: i32) -> (i32, i32) {
    %c0_i32 = arith.constant 0 : i32
    %c0_i32_0 = arith.constant 0 : i32
    return %c0_i32, %arg1 : i32, i32
  }
  func.func @transform_4(%arg0: i32, %arg1: i32) -> (i32, i32) {
    %c0_i32 = arith.constant 0 : i32
    %c0_i32_0 = arith.constant 0 : i32
    return %c0_i32, %arg1 : i32, i32
  }
  func.func @transform_5(%arg0: i32, %arg1: i32) -> (i32, i32) {
    %c0_i32 = arith.constant 0 : i32
    %c0_i32_0 = arith.constant 0 : i32
    return %arg1, %c0_i32 : i32, i32
  }
  func.func @transform_6(%arg0: i32, %arg1: i32) -> (i32, i32) {
    %c0_i32 = arith.constant 0 : i32
    %c0_i32_0 = arith.constant 0 : i32
    %c0_i32_1 = arith.constant 0 : i32
    return %c0_i32, %c0_i32_0 : i32, i32
  }
  func.func @transform_7(%arg0: i32, %arg1: i32) -> (i32, i32) {
    %c0_i32 = arith.constant 0 : i32
    %c0_i32_0 = arith.constant 0 : i32
    return %arg0, %c0_i32 : i32, i32
  }
}

</mosaic_0001>

<bundles_post_ra>
// kernel: tpu_custom_call.1
= control target key start
LH: loop header
LB: loop body
LE: loop exit
PB: predicated region body
PF: predicated region fallthrough
CT: control target
= control target key end

     0   :  { %12 = vsyncpa [#allocation3], 0  ;;  %s655_s0 = inlined_call_operand.hbm [shape: f32[16,128], index: 0, kind: input, shape index: {}]   ;;  %s656_s1 = inlined_call_operand.vmem [shape: f32[1,128], index: 1, kind: input, shape index: {}]   ;;  %s657_s2 = inlined_call_operand.vmem [shape: f32[1,128], index: 2, kind: input, shape index: {}]   ;;  %s658_s3 = inlined_call_operand.hbm [shape: f32[128,128], index: 3, kind: input, shape index: {}]   ;;  %s659_s4 = inlined_call_operand.vmem [shape: f32[1,128], index: 4, kind: input, shape index: {}]   ;;  %s660_s5 = inlined_call_operand.hbm [shape: f32[128,128], index: 5, kind: input, shape index: {}]   ;;  %s661_s6 = inlined_call_operand.vmem [shape: f32[1,128], index: 6, kind: input, shape index: {}]   ;;  %s662_s7 = inlined_call_operand.hbm [shape: f32[16,128], index: 7, kind: output, shape index: {}]  }
   0x1   :  { %13 = vsyncpa [#allocation6], 0 }
   0x2   :  { %14 = vsyncpa [#allocation4], 0  ;;  %s553_s24 = smov [#allocation5]   ;;  %s554_s26 = smov [#allocation2]  }
   0x3   :  { %s36_s25 = sshll.u32 %s553_s24, 4  ;;  %s20_s27 = sshll.u32 %s554_s26, 4  ;;  %s37_s25 = int_to_ptr.vmem [resolvable:$true] %s36_s25  ;;  %s21_s27 = int_to_ptr.vmem [resolvable:$true] %s20_s27 }
   0x4   :  { %s475_s28 = scalar_lea.vmem %s37_s25, 2048  ;;  %p480_p1 = scmp.lt.s32.totalorder %s37_s25, %s37_s25 }
   0x5   :  { %p476_p0 = scmp.ne.s32.totalorder %s37_s25, %s475_s28  ;;  %p481_p2 = scmp.lt.s32.totalorder %s475_s28, %s475_s28 }
   0x7   :  { %p482_p3 = por %p481_p2, %p480_p1 }
   0x9   :  { %p483_p4 = pnand %p482_p3, %p476_p0 }
   0xb   :  { %486 = shalt.err (!%p483_p4)
}
   0xc   :  { %s555_s29 = smov 128   ;;  %s556_s30 = smov 8  }
   0xd   :  { %42 = dma.hbm_to_vmem [thread:$0]  %s658_s3, 2048, %s37_s25, [#allocation6], %s555_s29, %s555_s29, %s556_s30  }
   0xe   :  { %s495_s10 = scalar_lea.vmem %s21_s27, 256  ;;  %p500_p6 = scmp.lt.s32.totalorder %s21_s27, %s21_s27 }
   0xf   :  { %p496_p5 = scmp.ne.s32.totalorder %s21_s27, %s495_s10  ;;  %p501_p7 = scmp.lt.s32.totalorder %s495_s10, %s495_s10 }
  0x11   :  { %p502_p8 = por %p501_p7, %p500_p6 }
  0x13   :  { %p503_p9 = pnand %p502_p8, %p496_p5 }
  0x15   :  { %506 = shalt.err (!%p503_p9)
}
  0x16   :  { %26 = dma.hbm_to_vmem [thread:$0]  %s655_s0, 256, %s21_s27, [#allocation3], %s555_s29, %s555_s29, %s556_s30  }
  0x17   :  { %s557_s13 = smov [#allocation7]  }
  0x18   :  { %s50_s14 = sshll.u32 %s557_s13, 4  ;;  %s51_s14 = int_to_ptr.vmem [resolvable:$true] %s50_s14 }
  0x19   :  { %s515_s15 = scalar_lea.vmem %s51_s14, 2048  ;;  %p520_p11 = scmp.lt.s32.totalorder %s51_s14, %s51_s14 }
  0x1a   :  { %p516_p10 = scmp.ne.s32.totalorder %s51_s14, %s515_s15  ;;  %p521_p12 = scmp.lt.s32.totalorder %s515_s15, %s515_s15 }
  0x1c   :  { %p522_p13 = por %p521_p12, %p520_p11 }
  0x1e   :  { %p523_p0 = pnand %p522_p13, %p516_p10 }
  0x20   :  { %526 = shalt.err (!%p523_p0)
}
  0x21   :  { %56 = dma.hbm_to_vmem [thread:$0]  %s660_s5, 2048, %s51_s14, [#allocation6], %s555_s29, %s555_s29, %s556_s30  }
  0x22   :  { %547 = dma.done.wait [#allocation3], 256  }
  0x23   :  { %548 = vsyncadd [#allocation3], 4294967040 }
  0x24   :  { %549 = dma.done.wait [#allocation6], 4096  }
  0x25   :  { %550 = vsyncadd [#allocation6], 4294963200  ;;  %v617_v0 = vld [vmem:[#allocation2] sm:$0xff]  ;;  %v620_v1 = vld [vmem:[#allocation2 + $0x8] sm:$0xff]  ;;  %v78_v4 = vlaneseq  ;;  %s558_s20 = smov [#allocation8]  }
  0x26   :  { %70 = vadd.xlane.f32.xlu0 %v617_v0  ;;  %v130_v2 = vld [vmem:[#allocation5 + $0x78] sm:$0xff]  ;;  %v129_v3 = vld [vmem:[#allocation5 + $0x70] sm:$0xff]  ;;  %v128_v16 = vld [vmem:[#allocation5 + $0x68] sm:$0xff]  ;;  %s330_s21 = sshll.u32 %s558_s20, 4  ;;  %s331_s21 = int_to_ptr.vmem [resolvable:$true] %s330_s21 }
  0x27   :  { %383 = vmatprep.subr.mxu0 %v130_v2  ;;  %v79_v5 = vand.u32 127, %v78_v4  ;;  %v127_v17 = vld [vmem:[#allocation5 + $0x60] sm:$0xff]  ;;  %v126_v18 = vld [vmem:[#allocation5 + $0x58] sm:$0xff]  ;;  %v125_v19 = vld [vmem:[#allocation5 + $0x50] sm:$0xff]  ;;  %s527_s22 = scalar_lea.vmem %s331_s21, 256  ;;  %p532_p2 = scmp.lt.s32.totalorder %s331_s21, %s331_s21 }
  0x28   :  { %384 = vmatpush3.msra.mxu0 %v130_v2  ;;  %v124_v20 = vld [vmem:[#allocation5 + $0x48] sm:$0xff]  ;;  %v123_v21 = vld [vmem:[#allocation5 + $0x40] sm:$0xff]  ;;  %v122_v22 = vld [vmem:[#allocation5 + $0x38] sm:$0xff]  ;;  %p528_p1 = scmp.ne.s32.totalorder %s331_s21, %s527_s22  ;;  %p533_p3 = scmp.lt.s32.totalorder %s527_s22, %s527_s22 }
  0x29   :  { %385 = vmatprep.subr.mxu0 %v129_v3  ;;  %vm80_vm0 = vcmp.lt.s32.totalorder %v79_v5, 32  ;;  %v121_v23 = vld [vmem:[#allocation5 + $0x30] sm:$0xff]  ;;  %v120_v24 = vld [vmem:[#allocation5 + $0x28] sm:$0xff]  ;;  %v119_v25 = vld [vmem:[#allocation5 + $0x20] sm:$0xff] }
  0x2a   :  { %72 = vadd.xlane.f32.xlu0 %v620_v1  ;;  %386 = vmatpush3.msra.mxu0 %v129_v3  ;;  %v118_v26 = vld [vmem:[#allocation5 + $0x18] sm:$0xff]  ;;  %v117_v27 = vld [vmem:[#allocation5 + $0x10] sm:$0xff]  ;;  %v116_v28 = vld [vmem:[#allocation5 + $0x8] sm:$0xff]  ;;  %p534_p4 = por %p533_p3, %p532_p2 }
  0x2b   :  { %387 = vmatprep.subr.mxu0 %v128_v16  ;;  %v115_v29 = vld [vmem:[#allocation5] sm:$0xff]  ;;  %v238_v30 = vld [vmem:[#allocation7 + $0x78] sm:$0xff]  ;;  %v237_v31 = vld [vmem:[#allocation7 + $0x70] sm:$0xff] }
  0x2c   :  { %388 = vmatpush3.msra.mxu0 %v128_v16  ;;  %418 = vmatprep.subr.mxu1 %v238_v30  ;;  %v236_v32 = vld [vmem:[#allocation7 + $0x68] sm:$0xff]  ;;  %v343_v40 = vld [vmem:[%s656_s1] ss:$0 sm:$0xff]  ;;  %v235_v49 = vld [vmem:[#allocation7 + $0x60] sm:$0xff]  ;;  %p535_p5 = pnand %p534_p4, %p528_p1 }
  0x2d   :  { %389 = vmatprep.subr.mxu0 %v127_v17  ;;  %419 = vmatpush3.msra.mxu1 %v238_v30  ;;  %v344_v42 = vld [vmem:[%s657_s2] ss:$0 sm:$0xff]  ;;  %v234_v50 = vld [vmem:[#allocation7 + $0x58] sm:$0xff]  ;;  %v232_v52 = vld [vmem:[#allocation7 + $0x48] sm:$0xff] }
  0x2e   :  { %390 = vmatpush3.msra.mxu0 %v127_v17  ;;  %420 = vmatprep.subr.mxu1 %v237_v31  ;;  %v233_v51 = vld [vmem:[#allocation7 + $0x50] sm:$0xff]  ;;  %v231_v53 = vld [vmem:[#allocation7 + $0x40] sm:$0xff]  ;;  %v230_v54 = vld [vmem:[#allocation7 + $0x38] sm:$0xff] }
  0x2f   :  { %391 = vmatprep.subr.mxu0 %v126_v18  ;;  %421 = vmatpush3.msra.mxu1 %v237_v31  ;;  %v229_v55 = vld [vmem:[#allocation7 + $0x30] sm:$0xff]  ;;  %v228_v56 = vld [vmem:[#allocation7 + $0x28] sm:$0xff]  ;;  %v227_v57 = vld [vmem:[#allocation7 + $0x20] sm:$0xff] }
  0x30   :  { %392 = vmatpush3.msra.mxu0 %v126_v18  ;;  %422 = vmatprep.subr.mxu1 %v236_v32  ;;  %v226_v58 = vld [vmem:[#allocation7 + $0x18] sm:$0xff]  ;;  %v225_v59 = vld [vmem:[#allocation7 + $0x10] sm:$0xff]  ;;  %v224_v60 = vld [vmem:[#allocation7 + $0x8] sm:$0xff] }
  0x31   :  { %393 = vmatprep.subr.mxu0 %v125_v19  ;;  %423 = vmatpush3.msra.mxu1 %v236_v32  ;;  %v223_v61 = vld [vmem:[#allocation7] sm:$0xff]  ;;  %v345_v62 = vld [vmem:[%s659_s4] ss:$0 sm:$0xff] }
  0x32   :  { %394 = vmatpush3.msra.mxu0 %v125_v19  ;;  %424 = vmatprep.subr.mxu1 %v235_v49 }
  0x33   :  { %395 = vmatprep.subr.mxu0 %v124_v20  ;;  %425 = vmatpush3.msra.mxu1 %v235_v49 }
  0x34   :  { %396 = vmatpush3.msra.mxu0 %v124_v20  ;;  %426 = vmatprep.subr.mxu1 %v234_v50 }
  0x35   :  { %397 = vmatprep.subr.mxu0 %v123_v21  ;;  %427 = vmatpush3.msra.mxu1 %v234_v50 }
  0x36   :  { %398 = vmatpush3.msra.mxu0 %v123_v21  ;;  %428 = vmatprep.subr.mxu1 %v233_v51 }
  0x37   :  { %399 = vmatprep.subr.mxu0 %v122_v22  ;;  %429 = vmatpush3.msra.mxu1 %v233_v51 }
  0x38   :  { %400 = vmatpush3.msra.mxu0 %v122_v22  ;;  %430 = vmatprep.subr.mxu1 %v232_v52 }
  0x39   :  { %401 = vmatprep.subr.mxu0 %v121_v23  ;;  %431 = vmatpush3.msra.mxu1 %v232_v52 }
  0x3a   :  { %402 = vmatpush3.msra.mxu0 %v121_v23  ;;  %432 = vmatprep.subr.mxu1 %v231_v53 }
  0x3b   :  { %403 = vmatprep.subr.mxu0 %v120_v24  ;;  %433 = vmatpush3.msra.mxu1 %v231_v53 }
  0x3c   :  { %404 = vmatpush3.msra.mxu0 %v120_v24  ;;  %434 = vmatprep.subr.mxu1 %v230_v54 }
  0x3d   :  { %405 = vmatprep.subr.mxu0 %v119_v25  ;;  %435 = vmatpush3.msra.mxu1 %v230_v54 }
  0x3e   :  { %406 = vmatpush3.msra.mxu0 %v119_v25  ;;  %436 = vmatprep.subr.mxu1 %v229_v55 }
  0x3f   :  { %407 = vmatprep.subr.mxu0 %v118_v26  ;;  %437 = vmatpush3.msra.mxu1 %v229_v55 }
  0x40   :  { %408 = vmatpush3.msra.mxu0 %v118_v26  ;;  %438 = vmatprep.subr.mxu1 %v228_v56 }
  0x41   :  { %409 = vmatprep.subr.mxu0 %v117_v27  ;;  %439 = vmatpush3.msra.mxu1 %v228_v56 }
  0x42   :  { %410 = vmatpush3.msra.mxu0 %v117_v27  ;;  %440 = vmatprep.subr.mxu1 %v227_v57 }
  0x43   :  { %411 = vmatprep.subr.mxu0 %v116_v28  ;;  %441 = vmatpush3.msra.mxu1 %v227_v57 }
  0x44   :  { %412 = vmatpush3.msra.mxu0 %v116_v28  ;;  %442 = vmatprep.subr.mxu1 %v226_v58 }
  0x45   :  { %413 = vmatprep.subr.mxu0 %v115_v29  ;;  %443 = vmatpush3.msra.mxu1 %v226_v58 }
  0x46   :  { %414 = vmatpush3.msra.mxu0 %v115_v29  ;;  %444 = vmatprep.subr.mxu1 %v225_v59 }
  0x47   :  { %445 = vmatpush3.msra.mxu1 %v225_v59 }
  0x48   :  { %446 = vmatprep.subr.mxu1 %v224_v60 }
  0x49   :  { %447 = vmatpush3.msra.mxu1 %v224_v60 }
  0x4a   :  { %448 = vmatprep.subr.mxu1 %v223_v61 }
  0x4b   :  { %449 = vmatpush3.msra.mxu1 %v223_v61 }
  0xaf   :  { %v71_v6 = vpop.xlane.xlu0 %70 }
  0xb0   :  { %v74_v7 = vmul.f32 0.03125, %v71_v6 }
  0xb2   :  { %v76_v8 = vsub.f32 %v617_v0, %v74_v7 }
  0xb3   :  { %v73_v9 = vpop.xlane.xlu0 %72 }
  0xb4   :  { %v75_v10 = vmul.f32 0.03125, %v73_v9  ;;  %v624_v11 = vsel %vm80_vm0, %v76_v8, 0.0 }
  0xb5   :  { %v83_v12 = vmul.f32 %v624_v11, %v624_v11 }
  0xb6   :  { %v77_v13 = vsub.f32 %v620_v1, %v75_v10 }
  0xb7   :  { %85 = vadd.xlane.f32.xlu1 %v83_v12 }
  0xb8   :  { %v629_v14 = vsel %vm80_vm0, %v77_v13, 0.0 }
  0xb9   :  { %v84_v15 = vmul.f32 %v629_v14, %v629_v14 }
  0xbb   :  { %87 = vadd.xlane.f32.xlu1 %v84_v15  ;;  %v346_v15 = vld [vmem:[%s661_s6] ss:$0 sm:$0xff] }
 0x140   :  { %v86_v33 = vpop.xlane.xlu1 %85 }
 0x141   :  { %v89_v34 = vmul.f32 0.03125, %v86_v33 }
 0x143   :  { %v91_v35 = vadd.f32 1e-05, %v89_v34 }
 0x144   :  { %v88_v36 = vpop.xlane.xlu1 %87 }
 0x145   :  { %459 = vrsqrt.f32 %v91_v35  ;;  %v90_v37 = vmul.f32 0.03125, %v88_v36 }
 0x147   :  { %v92_v38 = vadd.f32 1e-05, %v90_v37 }
 0x149   :  { %461 = vrsqrt.f32 %v92_v38 }
 0x152   :  { %v460_v39 = vpop.eup %459 }
 0x153   :  { %v95_v41 = vmul.f32 %v460_v39, %v624_v11 }
 0x155   :  { %v104_v43 = vmul.f32 %v343_v40, %v95_v41 }
 0x156   :  { %v462_v44 = vpop.eup %461 }
 0x157   :  { %v96_v45 = vmul.f32 %v462_v44, %v629_v14  ;;  %v113_v46 = vadd.f32 %v344_v42, %v104_v43 }
 0x159   :  { %v105_v47 = vmul.f32 %v343_v40, %v96_v45  ;;  %415 = vmatprep.mubr.f32.mxu0 %v113_v46 }
 0x15b   :  { %v114_v48 = vadd.f32 %v344_v42, %v105_v47 }
 0x15d   :  { %416 = vmatmul.mubr.f32.vlgmr.msra.gmra.mxu0 %v114_v48 }
 0x21d   :  { %v417_v63 = vpop.f32.mrf.mxu0 }
 0x21e   :  { %v210_v2 = vadd.f32 %v417_v63, %v345_v62 }
 0x21f   :  { %v204_v3 = vpop.f32.mrf.mxu0 }
 0x220   :  { %v216_v4 = vmul.f32 0.70710677, %v210_v2  ;;  %v205_v5 = vadd.f32 %v345_v62, %v204_v3  ;;  %v214_v12 = vmul.f32 0.5, %v210_v2 }
 0x222   :  { %463 = verf.f32 %v216_v4  ;;  %v215_v6 = vmul.f32 0.70710677, %v205_v5  ;;  %v213_v10 = vmul.f32 0.5, %v205_v5 }
 0x224   :  { %465 = verf.f32 %v215_v6 }
 0x22f   :  { %v464_v7 = vpop.eup %463 }
 0x230   :  { %v220_v9 = vadd.f32 1.0, %v464_v7 }
 0x231   :  { %v466_v8 = vpop.eup %465 }
 0x232   :  { %v219_v11 = vadd.f32 1.0, %v466_v8  ;;  %v222_v14 = vmul.f32 %v220_v9, %v214_v12 }
 0x234   :  { %v221_v13 = vmul.f32 %v219_v11, %v213_v10 }
 0x236   :  { %450 = vmatprep.mubr.f32.mxu1 %v221_v13 }
 0x237   :  { %451 = vmatmul.mubr.f32.vlgmr.msra.gmra.mxu1 %v222_v14 }
 0x2f7   :  { %v452_v16 = vpop.f32.mrf.mxu1 }
 0x2f8   :  { %v318_v17 = vadd.f32 %v452_v16, %v346_v15 }
 0x2f9   :  { %v312_v18 = vpop.f32.mrf.mxu1 }
 0x2fa   :  { %v322_v19 = vadd.f32 %v318_v17, %v620_v1  ;;  %v313_v20 = vadd.f32 %v346_v15, %v312_v18 }
 0x2fc   :  { %324 = vst [vmem:[#allocation8 + $0x8] sm:$0xff] %v322_v19  ;;  %v321_v21 = vadd.f32 %v313_v20, %v617_v0 }
 0x2fe   :  { %323 = vst [vmem:[#allocation8] sm:$0xff] %v321_v21 }
 0x2ff   :  { %538 = shalt.err (!%p535_p5)
}
 0x300   :  { %336 = dma.vmem_to_hbm [thread:$0]  %s331_s21, 256, %s662_s7, [#allocation4], %s555_s29, %s555_s29, %s556_s30  }
 0x301   :  { %551 = dma.done.wait [#allocation4], 256  }
 0x302   :  { %552 = vsyncadd [#allocation4], 4294967040 }
 0x303   :  { %340 = vsyncpa [#allocation3], 1 }
 0x304   :  { %341 = vsyncpa [#allocation6], 1 }
 0x305   :  { %342 = vsyncpa [#allocation4], 1 }

</bundles_post_ra>
